<compile_context>
chip_gen: v7x
topology: tpu7x:2x2x1
jax: 0.10.0
libtpu: 0.0.40
codegen_flags: <defaults>
</compile_context>

<pallas_src>
import jax
import jax.numpy as jnp
from jax.experimental import pallas as pl
from jax.experimental.pallas import tpu as pltpu


def temporal_cba_kernel(x1_ref, x2_ref, w1_ref, w2_ref, b_ref, o_ref):
    # x1_ref/x2_ref: (Cin, t_hw)   w1_ref/w2_ref: (Cout, Cin)
    # b_ref: (Cout, 1)             o_ref: (Cout, t_hw)
    x1 = x1_ref[...].astype(jnp.float32)
    x2 = x2_ref[...].astype(jnp.float32)
    w1 = w1_ref[...]
    w2 = w2_ref[...]
    cin = x1.shape[0]
    cout = w1.shape[0]

    if cin <= 8 and cout <= 8:
        # VPU broadcast-FMA path: contraction depth is tiny and the kernel is
        # HBM-bound anyway — skip MXU push/pop latency.  Loop is unrolled at
        # trace time (cin is a Python int).
        acc = w1[:, 0:1] * x1[0:1, :] + w2[:, 0:1] * x2[0:1, :]
        for ci in range(1, cin):
            acc = acc + w1[:, ci:ci + 1] * x1[ci:ci + 1, :]
            acc = acc + w2[:, ci:ci + 1] * x2[ci:ci + 1, :]
    else:
        # MXU path for real channel counts, f32 accumulation.
        acc = jnp.dot(w1, x1, preferred_element_type=jnp.float32)
        acc = acc + jnp.dot(w2, x2, preferred_element_type=jnp.float32)

    acc = acc + b_ref[...]                       # (Cout,1) broadcasts over lanes
    o_ref[...] = jnp.maximum(acc, 0.0).astype(o_ref.dtype)


def hl_interaction(hl1, hl2, weight, conv_bias, gamma, beta,
                   running_mean, running_var, eps=1e-5, target_tile=2048):
    """hl1/hl2: (N, Cin, H, W).  weight: (Cout, Cin, 2) — the Conv3d kernel
    (Cout, Cin, 2, 1, 1) with the trailing (1,1) squeezed.
    Returns (N, Cout, H, W)."""
    N, Cin, H, W = hl1.shape
    Cout = weight.shape[0]
    HW = H * W
    dtype = hl1.dtype

    # ---- fold BN (eval) + conv bias into weights / bias (wrapper-side algebra)
    scale = (gamma.astype(jnp.float32)
             / jnp.sqrt(running_var.astype(jnp.float32) + eps))          # (Cout,)
    w1 = weight[:, :, 0].astype(jnp.float32) * scale[:, None]            # (Cout, Cin)
    w2 = weight[:, :, 1].astype(jnp.float32) * scale[:, None]            # (Cout, Cin)
    bias = ((conv_bias.astype(jnp.float32) - running_mean.astype(jnp.float32))
            * scale + beta.astype(jnp.float32)).reshape(Cout, 1)         # (Cout, 1)

    # ---- choose a large, lane-aligned spatial tile under a VMEM budget.
    itemsize = jnp.dtype(dtype).itemsize
    vmem_budget = 8 * 1024 * 1024            # per-buffer working-set target
    # 2x for double-buffering of the (2*Cin in + Cout out) rows per lane column.
    max_t = max(128, vmem_budget // (2 * (2 * Cin + Cout) * itemsize))
    max_t = (max_t // 128) * 128
    t_hw = min(target_tile, max_t)
    if HW <= t_hw:
        t_hw = HW                             # full-extent block (always legal)
        hw_pad = HW
    else:
        t_hw = max(128, (t_hw // 128) * 128)
        hw_pad = t_hw * pl.cdiv(HW, t_hw)

    # Free reshapes (no transposes): spatial axis becomes the lane dimension.
    x1f = hl1.reshape(N, Cin, HW)
    x2f = hl2.reshape(N, Cin, HW)
    if hw_pad != HW:
        pad = ((0, 0), (0, 0), (0, hw_pad - HW))
        x1f = jnp.pad(x1f, pad)
        x2f = jnp.pad(x2f, pad)

    grid = (N, hw_pad // t_hw)

    out = pl.pallas_call(
        temporal_cba_kernel,
        out_shape=jax.ShapeDtypeStruct((N, Cout, hw_pad), dtype),
        grid_spec=pltpu.PrefetchScalarGridSpec(
            num_scalar_prefetch=0,
            grid=grid,
            in_specs=[
                pl.BlockSpec((None, Cin, t_hw), lambda n, j: (n, 0, j)),
                pl.BlockSpec((None, Cin, t_hw), lambda n, j: (n, 0, j)),
                pl.BlockSpec((Cout, Cin), lambda n, j: (0, 0)),
                pl.BlockSpec((Cout, Cin), lambda n, j: (0, 0)),
                pl.BlockSpec((Cout, 1), lambda n, j: (0, 0)),
            ],
            out_specs=pl.BlockSpec((None, Cout, t_hw), lambda n, j: (n, 0, j)),
        ),
        compiler_params=pltpu.CompilerParams(
            dimension_semantics=("parallel", "parallel"),
            vmem_limit_bytes=32 * 1024 * 1024,   # raises v5e's 16 MiB default; safe on v6e/v7x
        ),
    )(x1f, x2f, w1, w2, bias)

    if hw_pad != HW:
        out = out[:, :, :HW]
    return out.reshape(N, Cout, H, W)


if __name__ == "__main__":
    # HL_Interaction(in_channel=4): TemporalConv3d(4, 4).
    N, C, H, W = 2, 4, 16, 16

    key = jax.random.PRNGKey(0)
    k1, k2, kw, kb, kg, kbeta = jax.random.split(key, 6)

    hl1 = jax.random.normal(k1, (N, C, H, W), dtype=jnp.float32)
    hl2 = jax.random.normal(k2, (N, C, H, W), dtype=jnp.float32)

    # Conv3d weight (Cout, Cin, kT=2, 1, 1) with the trailing 1x1 squeezed.
    weight = jax.random.normal(kw, (C, C, 2), dtype=jnp.float32) * 0.1
    conv_bias = jax.random.normal(kb, (C,), dtype=jnp.float32) * 0.1
    gamma = 1.0 + 0.1 * jax.random.normal(kg, (C,), dtype=jnp.float32)
    beta = 0.1 * jax.random.normal(kbeta, (C,), dtype=jnp.float32)
    running_mean = jnp.zeros((C,), dtype=jnp.float32)
    running_var = jnp.ones((C,), dtype=jnp.float32)

    out = hl_interaction(hl1, hl2, weight, conv_bias, gamma, beta,
                         running_mean, running_var)
    out = jax.block_until_ready(out)

    # Pure-JAX reference (Conv3d(2,1,1) over the stacked pair -> BN eval -> ReLU).
    y_ref = (jnp.einsum('oc,nchw->nohw', weight[:, :, 0], hl1)
             + jnp.einsum('oc,nchw->nohw', weight[:, :, 1], hl2)
             + conv_bias[None, :, None, None])
    scale = gamma / jnp.sqrt(running_var + 1e-5)
    y_ref = (y_ref - running_mean[None, :, None, None]) * scale[None, :, None, None] \
            + beta[None, :, None, None]
    y_ref = jnp.maximum(y_ref, 0.0)

    assert out.shape == (N, C, H, W)
    assert jnp.allclose(out, y_ref, atol=1e-5, rtol=1e-5), "mismatch vs reference"

    print("KERNEL_OK")
</pallas_src>

<mosaic_0001>
module attributes {stable_mosaic.version = 11 : i64} {
  func.func @temporal_cba_kernel(%arg0: i32, %arg1: i32, %arg2: memref<1x4x256xf32, #tpu.memory_space<vmem>>, %arg3: memref<1x4x256xf32, #tpu.memory_space<vmem>>, %arg4: memref<4x4xf32, #tpu.memory_space<vmem>>, %arg5: memref<4x4xf32, #tpu.memory_space<vmem>>, %arg6: memref<4x1xf32, #tpu.memory_space<vmem>>, %arg7: memref<1x4x256xf32, #tpu.memory_space<vmem>>) attributes {dimension_semantics = [#tpu.dimension_semantics<parallel>, #tpu.dimension_semantics<parallel>], iteration_bounds = array<i64: 2, 1>, scalar_prefetch = 0 : i64, scratch_operands = 0 : i64, tpu.core_type = #tpu.core_type<tc>, window_params = [{transform_indices = @transform_0, window_bounds = array<i64: 1, 4, 256>}, {transform_indices = @transform_1, window_bounds = array<i64: 1, 4, 256>}, {pipeline_mode = #tpu.pipeline_mode<synchronous>, transform_indices = @transform_2, window_bounds = array<i64: 4, 4>}, {pipeline_mode = #tpu.pipeline_mode<synchronous>, transform_indices = @transform_3, window_bounds = array<i64: 4, 4>}, {pipeline_mode = #tpu.pipeline_mode<synchronous>, transform_indices = @transform_4, window_bounds = array<i64: 4, 1>}, {transform_indices = @transform_5, window_bounds = array<i64: 1, 4, 256>}]} {
    %c0 = arith.constant 0 : index
    %c0_0 = arith.constant 0 : index
    %c0_1 = arith.constant 0 : index
    %0 = vector.load %arg2[%c0, %c0_0, %c0_1] : memref<1x4x256xf32, #tpu.memory_space<vmem>>, vector<1x4x256xf32>
    %1 = vector.shape_cast %0 : vector<1x4x256xf32> to vector<4x256xf32>
    %c0_2 = arith.constant 0 : index
    %c0_3 = arith.constant 0 : index
    %c0_4 = arith.constant 0 : index
    %2 = vector.load %arg3[%c0_2, %c0_3, %c0_4] : memref<1x4x256xf32, #tpu.memory_space<vmem>>, vector<1x4x256xf32>
    %3 = vector.shape_cast %2 : vector<1x4x256xf32> to vector<4x256xf32>
    %c0_5 = arith.constant 0 : index
    %c0_6 = arith.constant 0 : index
    %4 = vector.load %arg4[%c0_5, %c0_6] : memref<4x4xf32, #tpu.memory_space<vmem>>, vector<4x4xf32>
    %c0_7 = arith.constant 0 : index
    %c0_8 = arith.constant 0 : index
    %5 = vector.load %arg5[%c0_7, %c0_8] : memref<4x4xf32, #tpu.memory_space<vmem>>, vector<4x4xf32>
    %6 = vector.extract_strided_slice %4 {offsets = [0, 0], sizes = [4, 1], strides = [1, 1]} : vector<4x4xf32> to vector<4x1xf32>
    %7 = vector.extract_strided_slice %1 {offsets = [0, 0], sizes = [1, 256], strides = [1, 1]} : vector<4x256xf32> to vector<1x256xf32>
    %8 = vector.broadcast %6 : vector<4x1xf32> to vector<4x256xf32>
    %9 = vector.broadcast %7 : vector<1x256xf32> to vector<4x256xf32>
    %10 = arith.mulf %8, %9 : vector<4x256xf32>
    %11 = vector.extract_strided_slice %5 {offsets = [0, 0], sizes = [4, 1], strides = [1, 1]} : vector<4x4xf32> to vector<4x1xf32>
    %12 = vector.extract_strided_slice %3 {offsets = [0, 0], sizes = [1, 256], strides = [1, 1]} : vector<4x256xf32> to vector<1x256xf32>
    %13 = vector.broadcast %11 : vector<4x1xf32> to vector<4x256xf32>
    %14 = vector.broadcast %12 : vector<1x256xf32> to vector<4x256xf32>
    %15 = arith.mulf %13, %14 : vector<4x256xf32>
    %16 = arith.addf %10, %15 : vector<4x256xf32>
    %17 = vector.extract_strided_slice %4 {offsets = [0, 1], sizes = [4, 1], strides = [1, 1]} : vector<4x4xf32> to vector<4x1xf32>
    %18 = vector.extract_strided_slice %1 {offsets = [1, 0], sizes = [1, 256], strides = [1, 1]} : vector<4x256xf32> to vector<1x256xf32>
    %19 = vector.broadcast %17 : vector<4x1xf32> to vector<4x256xf32>
    %20 = vector.broadcast %18 : vector<1x256xf32> to vector<4x256xf32>
    %21 = arith.mulf %19, %20 : vector<4x256xf32>
    %22 = arith.addf %16, %21 : vector<4x256xf32>
    %23 = vector.extract_strided_slice %5 {offsets = [0, 1], sizes = [4, 1], strides = [1, 1]} : vector<4x4xf32> to vector<4x1xf32>
    %24 = vector.extract_strided_slice %3 {offsets = [1, 0], sizes = [1, 256], strides = [1, 1]} : vector<4x256xf32> to vector<1x256xf32>
    %25 = vector.broadcast %23 : vector<4x1xf32> to vector<4x256xf32>
    %26 = vector.broadcast %24 : vector<1x256xf32> to vector<4x256xf32>
    %27 = arith.mulf %25, %26 : vector<4x256xf32>
    %28 = arith.addf %22, %27 : vector<4x256xf32>
    %29 = vector.extract_strided_slice %4 {offsets = [0, 2], sizes = [4, 1], strides = [1, 1]} : vector<4x4xf32> to vector<4x1xf32>
    %30 = vector.extract_strided_slice %1 {offsets = [2, 0], sizes = [1, 256], strides = [1, 1]} : vector<4x256xf32> to vector<1x256xf32>
    %31 = vector.broadcast %29 : vector<4x1xf32> to vector<4x256xf32>
    %32 = vector.broadcast %30 : vector<1x256xf32> to vector<4x256xf32>
    %33 = arith.mulf %31, %32 : vector<4x256xf32>
    %34 = arith.addf %28, %33 : vector<4x256xf32>
    %35 = vector.extract_strided_slice %5 {offsets = [0, 2], sizes = [4, 1], strides = [1, 1]} : vector<4x4xf32> to vector<4x1xf32>
    %36 = vector.extract_strided_slice %3 {offsets = [2, 0], sizes = [1, 256], strides = [1, 1]} : vector<4x256xf32> to vector<1x256xf32>
    %37 = vector.broadcast %35 : vector<4x1xf32> to vector<4x256xf32>
    %38 = vector.broadcast %36 : vector<1x256xf32> to vector<4x256xf32>
    %39 = arith.mulf %37, %38 : vector<4x256xf32>
    %40 = arith.addf %34, %39 : vector<4x256xf32>
    %41 = vector.extract_strided_slice %4 {offsets = [0, 3], sizes = [4, 1], strides = [1, 1]} : vector<4x4xf32> to vector<4x1xf32>
    %42 = vector.extract_strided_slice %1 {offsets = [3, 0], sizes = [1, 256], strides = [1, 1]} : vector<4x256xf32> to vector<1x256xf32>
    %43 = vector.broadcast %41 : vector<4x1xf32> to vector<4x256xf32>
    %44 = vector.broadcast %42 : vector<1x256xf32> to vector<4x256xf32>
    %45 = arith.mulf %43, %44 : vector<4x256xf32>
    %46 = arith.addf %40, %45 : vector<4x256xf32>
    %47 = vector.extract_strided_slice %5 {offsets = [0, 3], sizes = [4, 1], strides = [1, 1]} : vector<4x4xf32> to vector<4x1xf32>
    %48 = vector.extract_strided_slice %3 {offsets = [3, 0], sizes = [1, 256], strides = [1, 1]} : vector<4x256xf32> to vector<1x256xf32>
    %49 = vector.broadcast %47 : vector<4x1xf32> to vector<4x256xf32>
    %50 = vector.broadcast %48 : vector<1x256xf32> to vector<4x256xf32>
    %51 = arith.mulf %49, %50 : vector<4x256xf32>
    %52 = arith.addf %46, %51 : vector<4x256xf32>
    %c0_9 = arith.constant 0 : index
    %c0_10 = arith.constant 0 : index
    %53 = vector.load %arg6[%c0_9, %c0_10] : memref<4x1xf32, #tpu.memory_space<vmem>>, vector<4x1xf32>
    %54 = vector.broadcast %53 : vector<4x1xf32> to vector<4x256xf32>
    %55 = arith.addf %52, %54 : vector<4x256xf32>
    %cst = arith.constant 0.000000e+00 : f32
    %56 = vector.broadcast %cst : f32 to vector<4x256xf32>
    %57 = arith.maximumf %55, %56 : vector<4x256xf32>
    %c0_11 = arith.constant 0 : index
    %c0_12 = arith.constant 0 : index
    %c0_13 = arith.constant 0 : index
    %58 = vector.load %arg7[%c0_11, %c0_12, %c0_13] : memref<1x4x256xf32, #tpu.memory_space<vmem>>, vector<1x4x256xf32>
    %59 = vector.shape_cast %58 : vector<1x4x256xf32> to vector<4x256xf32>
    %60 = vector.shape_cast %57 : vector<4x256xf32> to vector<1x4x256xf32>
    tpu.vector_store %arg7[%c0_11, %c0_12, %c0_13], %60 {strides = array<i32>} : memref<1x4x256xf32, #tpu.memory_space<vmem>>, vector<1x4x256xf32>,
    return
  }
  func.func @transform_0(%arg0: i32, %arg1: i32) -> (i32, i32, i32) {
    %c0_i32 = arith.constant 0 : i32
    %c0_i32_0 = arith.constant 0 : i32
    return %arg0, %c0_i32, %arg1 : i32, i32, i32
  }
  func.func @transform_1(%arg0: i32, %arg1: i32) -> (i32, i32, i32) {
    %c0_i32 = arith.constant 0 : i32
    %c0_i32_0 = arith.constant 0 : i32
    return %arg0, %c0_i32, %arg1 : i32, i32, i32
  }
  func.func @transform_2(%arg0: i32, %arg1: i32) -> (i32, i32) {
    %c0_i32 = arith.constant 0 : i32
    %c0_i32_0 = arith.constant 0 : i32
    %c0_i32_1 = arith.constant 0 : i32
    return %c0_i32, %c0_i32_0 : i32, i32
  }
  func.func @transform_3(%arg0: i32, %arg1: i32) -> (i32, i32) {
    %c0_i32 = arith.constant 0 : i32
    %c0_i32_0 = arith.constant 0 : i32
    %c0_i32_1 = arith.constant 0 : i32
    return %c0_i32, %c0_i32_0 : i32, i32
  }
  func.func @transform_4(%arg0: i32, %arg1: i32) -> (i32, i32) {
    %c0_i32 = arith.constant 0 : i32
    %c0_i32_0 = arith.constant 0 : i32
    %c0_i32_1 = arith.constant 0 : i32
    return %c0_i32, %c0_i32_0 : i32, i32
  }
  func.func @transform_5(%arg0: i32, %arg1: i32) -> (i32, i32, i32) {
    %c0_i32 = arith.constant 0 : i32
    %c0_i32_0 = arith.constant 0 : i32
    return %arg0, %c0_i32, %arg1 : i32, i32, i32
  }
}

</mosaic_0001>

<bundles_post_ra>
// kernel: tpu_custom_call.1
= control target key start
LH: loop header
LB: loop body
LE: loop exit
PB: predicated region body
PF: predicated region fallthrough
CT: control target
= control target key end

     0   :  { %10 = vsyncpa [#allocation3], 0  ;;  %s1184_s0 = inlined_call_operand.hbm [shape: f32[2,4,256], index: 0, kind: input, shape index: {}]   ;;  %s1185_s1 = inlined_call_operand.hbm [shape: f32[2,4,256], index: 1, kind: input, shape index: {}]   ;;  %s1186_s2 = inlined_call_operand.vmem [shape: f32[4,4], index: 2, kind: input, shape index: {}]   ;;  %s1187_s3 = inlined_call_operand.vmem [shape: f32[4,4], index: 3, kind: input, shape index: {}]   ;;  %s1188_s4 = inlined_call_operand.vmem [shape: f32[4,1], index: 4, kind: input, shape index: {}]   ;;  %s1189_s5 = inlined_call_operand.hbm [shape: f32[2,4,256], index: 5, kind: output, shape index: {}]  }
   0x1   :  { %12 = vsyncpa [#allocation3 + $0x1], 0 }
   0x2   :  { %13 = vsyncpa [#allocation6], 0 }
   0x3   :  { %15 = vsyncpa [#allocation6 + $0x1], 0 }
   0x4   :  { %16 = vsyncpa [#allocation4], 0 }
   0x5   :  { %18 = vsyncpa [#allocation4 + $0x1], 0  ;;  %s946_s18 = smov 0   ;;  %s948_s19 = smov 0  }
   0x6   :  { %s950_s20 = smov 0   ;;  %s952_s21 = smov 0  }
   0x7   :  { %s954_s22 = smov 0   ;;  %s956_s23 = smov 0  }
   0x8 LB: > { %s660_s24 = sadd.s32 4294967295, %s907_s23   ;;  %s661_s25 = sadd.s32 4294967294, %s907_s23   ;;  %s907_s23 = sphi %s956_s23, %s24_s23   ;;  %s903_s22 = sphi %s954_s22, %s1209_s22   ;;  %s899_s21 = sphi %s952_s21, %s1208_s21   ;;  %s895_s20 = sphi %s950_s20, %s1207_s20   ;;  %s891_s19 = sphi %s948_s19, %s1206_s19   ;;  %s887_s18 = sphi %s946_s18, %s1205_s18  }
   0x9   : > { %s36_s26 = sadd.s32 1, %s903_s22  ;;  %s45_s27 = sadd.s32 1, %s895_s20 }
   0xa   : > { %p38_p0 = scmp.ge.s32.totalorder %s36_s26, 2  ;;  %p52_p1 = scmp.ne.s32.totalorder %s895_s20, %s891_s19 }
   0xb   : > { %p53_p2 = scmp.eq.s32.totalorder %s907_s23, 0  ;;  %p58_p3 = scmp.ne.s32.totalorder %s891_s19, %s887_s18 }
   0xc   : > { %s1211_s26 = smov (%p38_p0, %s36_s26), 0  ;;  %p59_p5 = scmp.eq.s32.totalorder %s660_s24, 0 }
   0xd   : > { %p987_p4 = por %p53_p2, %p52_p1  ;;  %s40_s29 = ssub.s32 %s903_s22, %s1211_s26 }
   0xe   : > { %p175_p6 = scmp.eq.s32.totalorder %s660_s24, 1  ;;  %p43_p7 = scmp.eq.s32.totalorder %s40_s29, 0 }
   0xf   : > { %p993_p8 = por %p59_p5, %p58_p3  ;;  %p181_p10 = scmp.eq.s32.totalorder %s661_s25, 1 }
  0x10   : > { %p997_p9 = por %p175_p6, %p52_p1  ;;  %p699_p13 = scmp.lt.s32.totalorder %s907_s23, 2 }
  0x11   : > { %s1193_s30 = scalar_select %p993_p8, 1, 0 }
  0x12   : > { %s1194_s6 = scalar_select %p997_p9, 1, 0 }
  0x13   : > { %s1002_s7 = scalar_select %p43_p7, %s895_s20, %s45_s27  }
  0x14   : > { %p1004_p11 = por %p181_p10, %p58_p3  ;;  %s1011_s9 = sand.u32 1, %s895_s20  }
  0x15   : > { %s664_s10 = sshll.u32 %s1011_s9, 3  ;;  %s679_s11 = sshll.u32 %s903_s22, 7 }
  0x16   : > { %s1195_s8 = scalar_select %p1004_p11, 1, 0 }
  0x17   : > { %s1020_s14 = scalar_lea.hbm %s1184_s0, %s679_s11  ;;  %s214_s15 = scalar_lea.vmem [#allocation2], %s664_s10 }
  0x18   : > { %s224_s16 = sshll.u32 %s214_s15, 4  ;;  %p1028_p0 = pnand %p699_p13, %p987_p4  ;;  %s1024_s16 = int_to_ptr.vmem [resolvable:$true] %s224_s16 }
  0x19   : > { %s211_s24 = scalar_lea.sflag [#allocation3], %s1011_s9  ;;  %s761_s25 = scalar_lea.hbm %s1020_s14, 128 }
  0x1a   : > { %p762_p3 = scmp.ne.s32.totalorder %s1020_s14, %s761_s25  ;;  %p763_p5 = pneg %p1028_p0 }
  0x1b   : > { %s766_s28 = scalar_lea.hbm %s1184_s0, 256  ;;  %p767_p4 = scmp.lt.u32.totalorder %s1020_s14, %s1184_s0 }
  0x1c   : > { %p764_p6 = pnand %p763_p5, %p762_p3  ;;  %p768_p10 = scmp.lt.u32.totalorder %s766_s28, %s761_s25 }
  0x1d   : > { %p770_p12 = scmp.lt.u32.totalorder %s761_s25, %s1020_s14 }
  0x1e   : > { %p765_p7 = pneg %p764_p6  ;;  %p769_p13 = por %p768_p10, %p767_p4 }
  0x20   : > { %p771_p1 = por %p770_p12, %p769_p13 }
  0x22   : > { %p772_p2 = pnand %p771_p1, %p765_p7 }
  0x24   : > { %775 = shalt.err (!%p772_p2)
}
  0x25   : > { %s776_s15 = scalar_lea.vmem %s1024_s16, 128  ;;  %s909_s27 = smov [#allocation2]  }
  0x26   : > { %p777_p3 = scmp.ne.s32.totalorder %s1024_s16, %s776_s15  ;;  %s781_s29 = sshll.u32 %s909_s27, 4  ;;  %s782_s29 = int_to_ptr.vmem [resolvable:$false] %s781_s29 }
  0x27   : > { %s783_s12 = scalar_lea.vmem %s782_s29, 256  ;;  %p784_p9 = scmp.lt.s32.totalorder %s1024_s16, %s782_s29 }
  0x28   : > { %p779_p6 = pnand %p777_p3, %p763_p5  ;;  %p785_p4 = scmp.lt.s32.totalorder %s783_s12, %s776_s15 }
  0x2a   : > { %p780_p11 = pneg %p779_p6  ;;  %p786_p10 = por %p785_p4, %p784_p9 }
  0x2c   : > { %p787_p12 = pnand %p786_p10, %p780_p11 }
  0x2e   : > { %790 = shalt.err (!%p787_p12)
}
  0x2f   : > { %691 = dma.hbm_to_vmem [thread:$0]  (!%p1028_p0), %s1020_s14, 128, %s1024_s16, %s211_s24  }
  0x30   : > { %p1197_p1 = scmp.lt.s32.totalorder %s907_s23, 3  ;;  %p1198_p2 = scmp.ge.s32.totalorder %s907_s23, 1 }
  0x31   : > { %s1073_s15 = scalar_lea.hbm %s1185_s1, %s679_s11  ;;  %s235_s27 = scalar_lea.vmem [#allocation5], %s664_s10 }
  0x32   : > { %p1064_p7 = pnand %p1198_p2, %p1197_p1  ;;  %s245_s29 = sshll.u32 %s235_s27, 4  ;;  %s246_s29 = int_to_ptr.vmem [resolvable:$true] %s245_s29 }
  0x33   : > { %s232_s14 = scalar_lea.sflag [#allocation6], %s1011_s9  ;;  %s791_s16 = scalar_lea.hbm %s1073_s15, 128 }
  0x34   : > { %s1199_s25 = scalar_select %p1064_p7, 1, 0 }
  0x35   : > { %p792_p9 = scmp.ne.s32.totalorder %s1073_s15, %s791_s16  ;;  %s796_s11 = scalar_lea.hbm %s1185_s1, 256 }
  0x36   : > { %p797_p3 = scmp.lt.u32.totalorder %s1073_s15, %s1185_s1  ;;  %p798_p6 = scmp.lt.u32.totalorder %s796_s11, %s791_s16 }
  0x37   : > { %p794_p11 = pnand %p792_p9, %p763_p5  ;;  %p800_p10 = scmp.lt.u32.totalorder %s791_s16, %s1073_s15 }
  0x38   : > { %p799_p4 = por %p798_p6, %p797_p3 }
  0x39   : > { %p795_p13 = pneg %p794_p11 }
  0x3a   : > { %p801_p12 = por %p800_p10, %p799_p4 }
  0x3c   : > { %p802_p1 = pnand %p801_p12, %p795_p13 }
  0x3e   : > { %805 = shalt.err (!%p802_p1)
}
  0x3f   : > { %s806_s9 = scalar_lea.vmem %s246_s29, 128  ;;  %s910_s10 = smov [#allocation5]  }
  0x40   : > { %p807_p2 = scmp.ne.s32.totalorder %s246_s29, %s806_s9  ;;  %s811_s27 = sshll.u32 %s910_s10, 4  ;;  %s812_s27 = int_to_ptr.vmem [resolvable:$false] %s811_s27 }
  0x41   : > { %s813_s24 = scalar_lea.vmem %s812_s27, 256  ;;  %p814_p8 = scmp.lt.s32.totalorder %s246_s29, %s812_s27 }
  0x42   : > { %p809_p9 = pnand %p807_p2, %p763_p5  ;;  %p815_p7 = scmp.lt.s32.totalorder %s813_s24, %s806_s9 }
  0x44   : > { %p810_p11 = pneg %p809_p9  ;;  %p816_p3 = por %p815_p7, %p814_p8 }
  0x46   : > { %p817_p6 = pnand %p816_p3, %p810_p11 }
  0x48   : > { %820 = shalt.err (!%p817_p6)
}
  0x49   : > { %694 = dma.hbm_to_vmem [thread:$0]  (!%p1028_p0), %s1073_s15, 128, %s246_s29, %s232_s14  }
  0x4a   : > { %p1200_p13 = scmp.ne.s32.totalorder %s1199_s25, 0 }
  0x4b   : > { %s1100_s16 = sand.u32 (!%p1200_p13), 1, %s891_s19   ;;  %p1201_p8 = scmp.ne.s32.totalorder (!%p1200_p13), %s1193_s30, 0 }
  0x4c   : > { %254 = sbr.rel (%p1200_p13) target bundleno = 256 (0x100), region = 40  ;;  %s1103_s12 = sshll.u32 (!%p1200_p13), %s1100_s16, 3 }
  0x4d   : > { %s257_s11 = scalar_lea.sflag (!%p1200_p13), [#allocation3], %s1100_s16  ;;  %s260_s28 = scalar_lea.vmem (!%p1200_p13), [#allocation2], %s1103_s12 }
  0x53   : > { %874 = dma.done.wait (%p1201_p8), %s257_s11, 128  }
  0x54   : > { %876 = vsyncadd (%p1201_p8), %s257_s11, 4294967168  ;;  %s266_s17 = scalar_lea.sflag [#allocation6], %s1100_s16  ;;  %s269_s25 = scalar_lea.vmem [#allocation5], %s1103_s12 }
  0x55   : > { %878 = dma.done.wait (%p1201_p8), %s266_s17, 128  }
  0x56   : > { %880 = vsyncadd (%p1201_p8), %s266_s17, 4294967168  ;;  %v911_v0 = vmov 1   ;;  %v912_v1 = vmov 0   ;;  %v306_v2 = vld [vmem:[%s1186_s2] sm:$0xf]  ;;  %v913_v4 = vmov 2   ;;  %v314_v7 = vlaneseq }
  0x57   : > { %754 = vset.pattern.permute.xlu1 %v911_v0  ;;  %753 = vset.pattern.permute.xlu0 %v912_v1  ;;  %v307_v3 = vld [vmem:[%s1187_s3] sm:$0xf]  ;;  %v914_v5 = vmov 3   ;;  %v305_v12 = vld [vmem:[%s269_s25] sm:$0xff]  ;;  %s681_s10 = sshll.u32 %s899_s21, 7  ;;  %s300_s27 = scalar_lea.vmem [#allocation7], %s1103_s12 }
  0x58   : > { %363 = vperm.xlu1 %754, %v306_v2   ;;  %310 = vperm.xlu0 %753, %v306_v2   ;;  %v518_v6 = vld [vmem:[%s1188_s4] sm:$0xf]  ;;  %v315_v8 = vshrl.u32 %v314_v7, 7  ;;  %s550_s24 = sshll.u32 %s300_s27, 4  ;;  %s1135_s17 = scalar_lea.hbm %s1189_s5, %s681_s10  ;;  %s1137_s24 = int_to_ptr.vmem [resolvable:$true] %s550_s24 }
  0x59   : > { %v304_v11 = vld [vmem:[%s260_s28] sm:$0xff]  ;;  %s534_s25 = scalar_lea.sflag [#allocation4], %s1100_s16  ;;  %s821_s15 = scalar_lea.vmem %s1137_s24, 128 }
  0x5a   : > { %v316_v9 = vsub.s32 0, %v315_v8  ;;  %v320_v10 = vsub.s32 4, %v315_v8  ;;  %v368_v13 = vsub.s32 1, %v315_v8  ;;  %v372_v14 = vsub.s32 5, %v315_v8  ;;  %p822_p0 = scmp.ne.s32.totalorder %s1137_s24, %s821_s15  ;;  %p1202_p5 = scmp.ne.s32.totalorder %s1194_s6, 0 }
  0x5b   : > { %v420_v19 = vsub.s32 2, %v315_v8  ;;  %v424_v20 = vsub.s32 6, %v315_v8  ;;  %v472_v33 = vsub.s32 3, %v315_v8  ;;  %v476_v34 = vsub.s32 7, %v315_v8  ;;  %s915_s21 = smov [#allocation7]  }
  0x5c   : > { %389 = vperm.xlu1 %754, %v307_v3   ;;  %336 = vperm.xlu0 %753, %v307_v3   ;;  %v317_v15 = vrot.slane %v304_v11, %v316_v9  ;;  %v321_v16 = vrot.slane %v304_v11, %v320_v10  ;;  %v343_v17 = vrot.slane %v305_v12, %v316_v9  ;;  %p823_p7 = pnand %p822_p0, %p1202_p5  ;;  %s825_s12 = sshll.u32 %s915_s21, 4  ;;  %s826_s12 = int_to_ptr.vmem [resolvable:$false] %s825_s12 }
  0x5d   : > { %v347_v18 = vrot.slane %v305_v12, %v320_v10  ;;  %v369_v21 = vrot.slane %v304_v11, %v368_v13  ;;  %v373_v22 = vrot.slane %v304_v11, %v372_v14  ;;  %v395_v25 = vrot.slane %v305_v12, %v368_v13  ;;  %s827_s29 = scalar_lea.vmem %s826_s12, 256  ;;  %p828_p10 = scmp.lt.s32.totalorder %s1137_s24, %s826_s12 }
  0x5e   : > { %v399_v26 = vrot.slane %v305_v12, %v372_v14  ;;  %v327_v27 = vrot.slane %v317_v15, %v316_v9  ;;  %v331_v28 = vrot.slane %v321_v16, %v316_v9  ;;  %v353_v29 = vrot.slane %v343_v17, %v316_v9  ;;  %p824_p4 = pneg %p823_p7  ;;  %p829_p12 = scmp.lt.s32.totalorder %s827_s29, %s821_s15 }
  0x5f   : > { %v357_v30 = vrot.slane %v347_v18, %v316_v9  ;;  %v421_v31 = vrot.slane %v304_v11, %v420_v19  ;;  %v425_v32 = vrot.slane %v304_v11, %v424_v20  ;;  %v379_v35 = vrot.slane %v369_v21, %v368_v13 }
  0x60   : > { %756 = vset.pattern.permute.xlu1 %v913_v4  ;;  %755 = vset.pattern.permute.xlu0 %v913_v4  ;;  %v383_v36 = vrot.slane %v373_v22, %v368_v13  ;;  %v405_v38 = vrot.slane %v395_v25, %v368_v13  ;;  %v409_v39 = vrot.slane %v399_v26, %v368_v13  ;;  %p830_p1 = por %p829_p12, %p828_p10 }
  0x61   : > { %441 = vperm.xlu1 %756, %v307_v3   ;;  %415 = vperm.xlu0 %755, %v306_v2   ;;  %v447_v41 = vrot.slane %v305_v12, %v420_v19  ;;  %v451_v42 = vrot.slane %v305_v12, %v424_v20  ;;  %v431_v47 = vrot.slane %v421_v31, %v420_v19 }
  0x62   : > { %v435_v48 = vrot.slane %v425_v32, %v420_v19  ;;  %v473_v49 = vrot.slane %v304_v11, %v472_v33  ;;  %v477_v50 = vrot.slane %v304_v11, %v476_v34  ;;  %v499_v57 = vrot.slane %v305_v12, %v472_v33  ;;  %p831_p2 = pnand %p830_p1, %p824_p4 }
  0x63   : > { %v457_v55 = vrot.slane %v447_v41, %v420_v19  ;;  %v461_v56 = vrot.slane %v451_v42, %v420_v19  ;;  %v503_v58 = vrot.slane %v305_v12, %v476_v34 }
  0x64   : > { %v509_v7 = vrot.slane %v499_v57, %v472_v33 }
  0x65   : > { %757 = vset.pattern.permute.xlu1 %v914_v5  ;;  %758 = vset.pattern.permute.xlu0 %v914_v5  ;;  %v483_v5 = vrot.slane %v473_v49, %v472_v33  ;;  %v513_v8 = vrot.slane %v503_v58, %v472_v33 }
  0x66   : > { %467 = vperm.xlu1 %757, %v306_v2   ;;  %493 = vperm.xlu0 %758, %v307_v3  }
  0x6a   : > { %759 = vset.pattern.permute.xlu1 %v912_v1  ;;  %760 = vset.pattern.permute.xlu0 %v912_v1 }
  0x6b   : > { %521 = vperm.xlu1 %759, %v518_v6   ;;  %v487_v6 = vrot.slane %v477_v50, %v472_v33 }
  0xd7   : > { %v364_v23 = vpop.permute.xlu1 %363  ;;  %v311_v24 = vpop.permute.xlu0 %310 }
  0xd8   : > { %v332_v43 = vmul.f32 %v327_v27, %v311_v24  ;;  %v333_v44 = vmul.f32 %v331_v28, %v311_v24  ;;  %v384_v51 = vmul.f32 %v379_v35, %v364_v23  ;;  %v385_v52 = vmul.f32 %v383_v36, %v364_v23 }
  0xdb   : > { %v390_v37 = vpop.permute.xlu1 %389  ;;  %v337_v40 = vpop.permute.xlu0 %336 }
  0xdc   : > { %v358_v45 = vmul.f32 %v353_v29, %v337_v40  ;;  %v359_v46 = vmul.f32 %v357_v30, %v337_v40  ;;  %v410_v59 = vmul.f32 %v405_v38, %v390_v37  ;;  %v411_v60 = vmul.f32 %v409_v39, %v390_v37 }
  0xde   : > { %v360_v53 = vadd.f32 %v358_v45, %v332_v43  ;;  %v361_v54 = vadd.f32 %v359_v46, %v333_v44 }
  0xe0   : > { %v386_v61 = vadd.f32 %v384_v51, %v360_v53  ;;  %v387_v62 = vadd.f32 %v385_v52, %v361_v54  ;;  %v442_v63 = vpop.permute.xlu1 %441  ;;  %v416_v0 = vpop.permute.xlu0 %415 }
  0xe1   : > { %v436_v1 = vmul.f32 %v431_v47, %v416_v0  ;;  %v437_v2 = vmul.f32 %v435_v48, %v416_v0  ;;  %v462_v9 = vmul.f32 %v457_v55, %v442_v63  ;;  %v463_v10 = vmul.f32 %v461_v56, %v442_v63 }
  0xe2   : > { %v412_v3 = vadd.f32 %v410_v59, %v386_v61  ;;  %v413_v4 = vadd.f32 %v411_v60, %v387_v62 }
  0xe4   : > { %v438_v11 = vadd.f32 %v436_v1, %v412_v3  ;;  %v439_v13 = vadd.f32 %v437_v2, %v413_v4 }
  0xe5   : > { %v468_v12 = vpop.permute.xlu1 %467  ;;  %v494_v14 = vpop.permute.xlu0 %493 }
  0xe6   : > { %v464_v15 = vadd.f32 %v462_v9, %v438_v11  ;;  %v465_v16 = vadd.f32 %v463_v10, %v439_v13  ;;  %v488_v17 = vmul.f32 %v483_v5, %v468_v12  ;;  %v489_v18 = vmul.f32 %v487_v6, %v468_v12 }
  0xe7   : > { %v514_v19 = vmul.f32 %v509_v7, %v494_v14  ;;  %v515_v20 = vmul.f32 %v513_v8, %v494_v14 }
  0xe8   : > { %v490_v21 = vadd.f32 %v488_v17, %v464_v15  ;;  %v491_v22 = vadd.f32 %v489_v18, %v465_v16 }
  0xea   : > { %v522_v23 = vpop.permute.xlu1 %521  ;;  %v516_v24 = vadd.f32 %v514_v19, %v490_v21  ;;  %v517_v25 = vadd.f32 %v515_v20, %v491_v22 }
  0xec   : > { %v524_v26 = vadd.f32 %v522_v23, %v516_v24  ;;  %v525_v27 = vadd.f32 %v522_v23, %v517_v25 }
  0xee   : > { %v526_v28 = vmax.f32 %v524_v26, 0.0  ;;  %v527_v29 = vmax.f32 %v525_v27, 0.0 }
  0xf0   : > { %v530_v30 = vcombine.low %v526_v28, %v527_v29 }
  0xf2   : > { %532 = vst [vmem:[%s300_s27] sm:$0xff] %v530_v30 }
  0xf3   : > { %834 = shalt.err (!%p831_p2)
}
  0xf4   : > { %s835_s16 = scalar_lea.hbm %s1135_s17, 128  ;;  %s839_s30 = scalar_lea.hbm %s1189_s5, 256 }
  0xf5   : > { %p836_p9 = scmp.ne.s32.totalorder %s1135_s17, %s835_s16  ;;  %p840_p6 = scmp.lt.u32.totalorder %s1135_s17, %s1189_s5 }
  0xf6   : > { %p841_p13 = scmp.lt.u32.totalorder %s839_s30, %s835_s16  ;;  %p843_p0 = scmp.lt.u32.totalorder %s835_s16, %s1135_s17 }
  0xf7   : > { %p837_p11 = pnand %p836_p9, %p1202_p5 }
  0xf8   : > { %p842_p8 = por %p841_p13, %p840_p6 }
  0xf9   : > { %p838_p3 = pneg %p837_p11 }
  0xfa   : > { %p844_p7 = por %p843_p0, %p842_p8 }
  0xfc   : > { %p845_p4 = pnand %p844_p7, %p838_p3 }
  0xfe   : > { %848 = shalt.err (!%p845_p4)
}
  0xff   : > { %686 = dma.vmem_to_hbm [thread:$0]  (%p1202_p5), %s1137_s24, 128, %s1135_s17, %s534_s25  }
 0x100 PF: > { %s562_s27 = sand.u32 1, %s887_s18   ;;  %p1203_p10 = scmp.ne.s32.totalorder %s1195_s8, 0 }
 0x101   : > { %p1204_p12 = scmp.ge.s32.totalorder %s907_s23, 2  ;;  %s563_s11 = scalar_lea.sflag [#allocation4], %s562_s27 }
 0x103   : > { %p696_p1 = pnand %p1204_p12, %p1203_p10 }
 0x105   : > { %882 = dma.done.wait (!%p696_p1), %s563_s11, 128  }
 0x106   : > { %884 = vsyncadd (!%p696_p1), %s563_s11, 4294967168  ;;  %s24_s23 = sadd.s32 1, %s907_s23   ;;  %s1205_s18 = smov %s891_s19 }
 0x107   : > { %p21_p2 = scmp.ge.s32.totalorder %s24_s23, 4   ;;  %s1206_s19 = smov %s895_s20 }
 0x108   : > { %s1207_s20 = smov %s1002_s7  ;;  %s1208_s21 = smov %s903_s22 }
 0x109   : > { %s1209_s22 = smov %s1211_s26  ;;  %23 = sbr.rel (!%p21_p2) target bundleno = 8 (0x8), region = 98 }
 0x110   :  { %568 = vsyncpa [#allocation3], 1 }
 0x111   :  { %570 = vsyncpa [#allocation3 + $0x1], 1 }
 0x112   :  { %571 = vsyncpa [#allocation6], 1 }
 0x113   :  { %573 = vsyncpa [#allocation6 + $0x1], 1 }
 0x114   :  { %574 = vsyncpa [#allocation4], 1 }
 0x115   :  { %576 = vsyncpa [#allocation4 + $0x1], 1 }

</bundles_post_ra>
